<compile_context>
chip_gen: v5e
topology: v5e:2x2
jax: 0.10.0
libtpu: 0.0.40
codegen_flags: <defaults>
</compile_context>

<pallas_src>
import jax
import jax.numpy as jnp
from jax.experimental import pallas as pl
from jax.experimental.pallas import tpu as pltpu


def mlp_kernel(x_ref, w1_ref, b1_ref, w2_ref, b2_ref,
               w3_ref, b3_ref, w4_ref, b4_ref, o_ref):
    # x tile: (TB, 267) bf16
    x = x_ref[...]

    # fc1 + ReLU   (dropout1 = identity in eval mode)
    h = jnp.dot(x, w1_ref[...], preferred_element_type=jnp.float32) + b1_ref[...]
    h = jnp.maximum(h, 0.0).astype(jnp.bfloat16)

    # fc2 + ReLU   (dropout2 = identity)
    h = jnp.dot(h, w2_ref[...], preferred_element_type=jnp.float32) + b2_ref[...]
    h = jnp.maximum(h, 0.0).astype(jnp.bfloat16)

    # fc3 + ReLU   (dropout3 = identity)
    h = jnp.dot(h, w3_ref[...], preferred_element_type=jnp.float32) + b3_ref[...]
    h = jnp.maximum(h, 0.0).astype(jnp.bfloat16)

    # fc4 + log_softmax over the 2-class axis, written as an explicit
    # two-column logsumexp (no cross-lane XLU reductions).
    logits = jnp.dot(h, w4_ref[...], preferred_element_type=jnp.float32) + b4_ref[...]
    l0 = logits[:, 0:1]
    l1 = logits[:, 1:2]
    m = jnp.maximum(l0, l1)
    lse = m + jnp.log(jnp.exp(l0 - m) + jnp.exp(l1 - m))   # (TB, 1)
    o_ref[...] = logits - lse                               # broadcast over 2 cols


def _round_up(n, m):
    return ((n + m - 1) // m) * m


def nn4_dropout_forward(x, params, tb=512):
    """x: (B, 267) float. params: f32 weights stored (in, out) + (1, out) biases.
    Returns (B, 2) f32 log-probabilities (eval-mode forward)."""
    B, D = x.shape
    # Batch tile: multiple of 8 sublanes, capped at `tb` (sized with v7x's
    # smaller VMEM in mind; the HBM roofline saturates well before this).
    TB = min(tb, _round_up(B, 8))
    B_pad = _round_up(B, TB)

    xb = x.astype(jnp.bfloat16)
    if B_pad != B:
        xb = jnp.pad(xb, ((0, B_pad - B), (0, 0)))

    w1 = params["w1"].astype(jnp.bfloat16); b1 = params["b1"]
    w2 = params["w2"].astype(jnp.bfloat16); b2 = params["b2"]
    w3 = params["w3"].astype(jnp.bfloat16); b3 = params["b3"]
    w4 = params["w4"].astype(jnp.bfloat16); b4 = params["b4"]

    x_spec = pl.BlockSpec((TB, D), lambda i: (i, 0))
    # Constant block index -> DMA'd once, VMEM-resident across all batch tiles.
    resident = lambda a: pl.BlockSpec(a.shape, lambda i: (0, 0))

    out = pl.pallas_call(
        mlp_kernel,
        out_shape=jax.ShapeDtypeStruct((B_pad, 2), jnp.float32),
        grid=(B_pad // TB,),
        in_specs=[x_spec,
                  resident(w1), resident(b1),
                  resident(w2), resident(b2),
                  resident(w3), resident(b3),
                  resident(w4), resident(b4)],
        out_specs=pl.BlockSpec((TB, 2), lambda i: (i, 0)),
        compiler_params=pltpu.CompilerParams(
            dimension_semantics=("parallel",)),
    )(xb, w1, b1, w2, b2, w3, b3, w4, b4)
    return out[:B]


def init_params(key):
    """Deterministic init mimicking torch.nn.Linear default U[-1/sqrt(in), 1/sqrt(in)]."""
    dims = [(267, 36), (36, 36), (36, 36), (36, 2)]
    params = {}
    keys = jax.random.split(key, 2 * len(dims))
    for i, (fin, fout) in enumerate(dims):
        bound = 1.0 / (fin ** 0.5)
        # Stored (in, out) so the kernel computes x @ W (== torch's x @ W.T).
        params[f"w{i+1}"] = jax.random.uniform(
            keys[2 * i], (fin, fout), jnp.float32, -bound, bound)
        params[f"b{i+1}"] = jax.random.uniform(
            keys[2 * i + 1], (1, fout), jnp.float32, -bound, bound)
    return params


def reference_forward(x, params):
    """Pure-JAX reference mirroring the kernel numerics (bf16 operands, f32 acc)."""
    bf = jnp.bfloat16

    def lin(h, w, b):
        return jnp.dot(h.astype(bf), w.astype(bf),
                       preferred_element_type=jnp.float32) + b

    h = jnp.maximum(lin(x, params["w1"], params["b1"]), 0.0)
    h = jnp.maximum(lin(h, params["w2"], params["b2"]), 0.0)
    h = jnp.maximum(lin(h, params["w3"], params["b3"]), 0.0)
    logits = lin(h, params["w4"], params["b4"])
    return jax.nn.log_softmax(logits, axis=1)


if __name__ == "__main__":
    key = jax.random.PRNGKey(0)
    k_param, k_x1, k_x2 = jax.random.split(key, 3)
    params = init_params(k_param)

    # Small single-tile case (B = 8).
    x_small = jax.random.normal(k_x1, (8, 267), dtype=jnp.float32)
    out_small = jax.block_until_ready(nn4_dropout_forward(x_small, params))
    ref_small = reference_forward(x_small, params)
    assert out_small.shape == (8, 2)
    assert jnp.allclose(out_small, ref_small, atol=1e-2, rtol=1e-2)

    # Multi-tile + ragged-batch case (exercises the grid, padding and the
    # parallel batch axis): B = 50 with a 16-row tile -> 4 grid steps.
    x_multi = jax.random.normal(k_x2, (50, 267), dtype=jnp.float32)
    out_multi = jax.block_until_ready(nn4_dropout_forward(x_multi, params, tb=16))
    ref_multi = reference_forward(x_multi, params)
    assert out_multi.shape == (50, 2)
    assert jnp.allclose(out_multi, ref_multi, atol=1e-2, rtol=1e-2)

    print("KERNEL_OK")
</pallas_src>

<mosaic_0001>
module attributes {stable_mosaic.version = 11 : i64} {
  func.func @mlp_kernel(%arg0: i32, %arg1: memref<8x267xbf16, #tpu.memory_space<vmem>>, %arg2: memref<267x36xbf16, #tpu.memory_space<vmem>>, %arg3: memref<1x36xf32, #tpu.memory_space<vmem>>, %arg4: memref<36x36xbf16, #tpu.memory_space<vmem>>, %arg5: memref<1x36xf32, #tpu.memory_space<vmem>>, %arg6: memref<36x36xbf16, #tpu.memory_space<vmem>>, %arg7: memref<1x36xf32, #tpu.memory_space<vmem>>, %arg8: memref<36x2xbf16, #tpu.memory_space<vmem>>, %arg9: memref<1x2xf32, #tpu.memory_space<vmem>>, %arg10: memref<8x2xf32, #tpu.memory_space<vmem>>) attributes {dimension_semantics = [#tpu.dimension_semantics<parallel>], iteration_bounds = array<i64: 1>, scalar_prefetch = 0 : i64, scratch_operands = 0 : i64, tpu.core_type = #tpu.core_type<tc>, window_params = [{transform_indices = @transform_0, window_bounds = array<i64: 8, 267>}, {pipeline_mode = #tpu.pipeline_mode<synchronous>, transform_indices = @transform_1, window_bounds = array<i64: 267, 36>}, {pipeline_mode = #tpu.pipeline_mode<synchronous>, transform_indices = @transform_2, window_bounds = array<i64: 1, 36>}, {pipeline_mode = #tpu.pipeline_mode<synchronous>, transform_indices = @transform_3, window_bounds = array<i64: 36, 36>}, {pipeline_mode = #tpu.pipeline_mode<synchronous>, transform_indices = @transform_4, window_bounds = array<i64: 1, 36>}, {pipeline_mode = #tpu.pipeline_mode<synchronous>, transform_indices = @transform_5, window_bounds = array<i64: 36, 36>}, {pipeline_mode = #tpu.pipeline_mode<synchronous>, transform_indices = @transform_6, window_bounds = array<i64: 1, 36>}, {pipeline_mode = #tpu.pipeline_mode<synchronous>, transform_indices = @transform_7, window_bounds = array<i64: 36, 2>}, {pipeline_mode = #tpu.pipeline_mode<synchronous>, transform_indices = @transform_8, window_bounds = array<i64: 1, 2>}, {transform_indices = @transform_9, window_bounds = array<i64: 8, 2>}]} {
    %c0 = arith.constant 0 : index
    %c0_0 = arith.constant 0 : index
    %0 = vector.load %arg1[%c0, %c0_0] : memref<8x267xbf16, #tpu.memory_space<vmem>>, vector<8x267xbf16>
    %c0_1 = arith.constant 0 : index
    %c0_2 = arith.constant 0 : index
    %1 = vector.load %arg2[%c0_1, %c0_2] : memref<267x36xbf16, #tpu.memory_space<vmem>>, vector<267x36xbf16>
    %cst = arith.constant dense<0.000000e+00> : vector<8x36xf32>
    %2 = tpu.matmul %0, %1, %cst {dimension_numbers = #tpu.dot_dimension_numbers<[1], [0], [0], [1], [0, 0, 1, 1], [], []>} : vector<8x267xbf16>, vector<267x36xbf16>, vector<8x36xf32> -> vector<8x36xf32>
    %c0_3 = arith.constant 0 : index
    %c0_4 = arith.constant 0 : index
    %3 = vector.load %arg3[%c0_3, %c0_4] : memref<1x36xf32, #tpu.memory_space<vmem>>, vector<1x36xf32>
    %4 = vector.broadcast %3 : vector<1x36xf32> to vector<8x36xf32>
    %5 = arith.addf %2, %4 : vector<8x36xf32>
    %cst_5 = arith.constant 0.000000e+00 : f32
    %6 = vector.broadcast %cst_5 : f32 to vector<8x36xf32>
    %7 = arith.maximumf %5, %6 : vector<8x36xf32>
    %8 = arith.truncf %7 : vector<8x36xf32> to vector<8x36xbf16>
    %c0_6 = arith.constant 0 : index
    %c0_7 = arith.constant 0 : index
    %9 = vector.load %arg4[%c0_6, %c0_7] : memref<36x36xbf16, #tpu.memory_space<vmem>>, vector<36x36xbf16>
    %cst_8 = arith.constant dense<0.000000e+00> : vector<8x36xf32>
    %10 = tpu.matmul %8, %9, %cst_8 {dimension_numbers = #tpu.dot_dimension_numbers<[1], [0], [0], [1], [0, 0, 1, 1], [], []>} : vector<8x36xbf16>, vector<36x36xbf16>, vector<8x36xf32> -> vector<8x36xf32>
    %c0_9 = arith.constant 0 : index
    %c0_10 = arith.constant 0 : index
    %11 = vector.load %arg5[%c0_9, %c0_10] : memref<1x36xf32, #tpu.memory_space<vmem>>, vector<1x36xf32>
    %12 = vector.broadcast %11 : vector<1x36xf32> to vector<8x36xf32>
    %13 = arith.addf %10, %12 : vector<8x36xf32>
    %cst_11 = arith.constant 0.000000e+00 : f32
    %14 = vector.broadcast %cst_11 : f32 to vector<8x36xf32>
    %15 = arith.maximumf %13, %14 : vector<8x36xf32>
    %16 = arith.truncf %15 : vector<8x36xf32> to vector<8x36xbf16>
    %c0_12 = arith.constant 0 : index
    %c0_13 = arith.constant 0 : index
    %17 = vector.load %arg6[%c0_12, %c0_13] : memref<36x36xbf16, #tpu.memory_space<vmem>>, vector<36x36xbf16>
    %cst_14 = arith.constant dense<0.000000e+00> : vector<8x36xf32>
    %18 = tpu.matmul %16, %17, %cst_14 {dimension_numbers = #tpu.dot_dimension_numbers<[1], [0], [0], [1], [0, 0, 1, 1], [], []>} : vector<8x36xbf16>, vector<36x36xbf16>, vector<8x36xf32> -> vector<8x36xf32>
    %c0_15 = arith.constant 0 : index
    %c0_16 = arith.constant 0 : index
    %19 = vector.load %arg7[%c0_15, %c0_16] : memref<1x36xf32, #tpu.memory_space<vmem>>, vector<1x36xf32>
    %20 = vector.broadcast %19 : vector<1x36xf32> to vector<8x36xf32>
    %21 = arith.addf %18, %20 : vector<8x36xf32>
    %cst_17 = arith.constant 0.000000e+00 : f32
    %22 = vector.broadcast %cst_17 : f32 to vector<8x36xf32>
    %23 = arith.maximumf %21, %22 : vector<8x36xf32>
    %24 = arith.truncf %23 : vector<8x36xf32> to vector<8x36xbf16>
    %c0_18 = arith.constant 0 : index
    %c0_19 = arith.constant 0 : index
    %25 = vector.load %arg8[%c0_18, %c0_19] : memref<36x2xbf16, #tpu.memory_space<vmem>>, vector<36x2xbf16>
    %cst_20 = arith.constant dense<0.000000e+00> : vector<8x2xf32>
    %26 = tpu.matmul %24, %25, %cst_20 {dimension_numbers = #tpu.dot_dimension_numbers<[1], [0], [0], [1], [0, 0, 1, 1], [], []>} : vector<8x36xbf16>, vector<36x2xbf16>, vector<8x2xf32> -> vector<8x2xf32>
    %c0_21 = arith.constant 0 : index
    %c0_22 = arith.constant 0 : index
    %27 = vector.load %arg9[%c0_21, %c0_22] : memref<1x2xf32, #tpu.memory_space<vmem>>, vector<1x2xf32>
    %28 = vector.broadcast %27 : vector<1x2xf32> to vector<8x2xf32>
    %29 = arith.addf %26, %28 : vector<8x2xf32>
    %30 = vector.extract_strided_slice %29 {offsets = [0, 0], sizes = [8, 1], strides = [1, 1]} : vector<8x2xf32> to vector<8x1xf32>
    %31 = vector.extract_strided_slice %29 {offsets = [0, 1], sizes = [8, 1], strides = [1, 1]} : vector<8x2xf32> to vector<8x1xf32>
    %32 = arith.maximumf %30, %31 : vector<8x1xf32>
    %33 = arith.subf %30, %32 : vector<8x1xf32>
    %34 = math.exp %33 : vector<8x1xf32>
    %35 = arith.subf %31, %32 : vector<8x1xf32>
    %36 = math.exp %35 : vector<8x1xf32>
    %37 = arith.addf %34, %36 : vector<8x1xf32>
    %38 = math.log %37 : vector<8x1xf32>
    %39 = arith.addf %32, %38 : vector<8x1xf32>
    %40 = vector.broadcast %39 : vector<8x1xf32> to vector<8x2xf32>
    %41 = arith.subf %29, %40 : vector<8x2xf32>
    %c0_23 = arith.constant 0 : index
    %c0_24 = arith.constant 0 : index
    %42 = vector.load %arg10[%c0_23, %c0_24] : memref<8x2xf32, #tpu.memory_space<vmem>>, vector<8x2xf32>
    tpu.vector_store %arg10[%c0_23, %c0_24], %41 {strides = array<i32>} : memref<8x2xf32, #tpu.memory_space<vmem>>, vector<8x2xf32>,
    return
  }
  func.func @transform_0(%arg0: i32) -> (i32, i32) {
    %c0_i32 = arith.constant 0 : i32
    %c0_i32_0 = arith.constant 0 : i32
    return %arg0, %c0_i32 : i32, i32
  }
  func.func @transform_1(%arg0: i32) -> (i32, i32) {
    %c0_i32 = arith.constant 0 : i32
    %c0_i32_0 = arith.constant 0 : i32
    %c0_i32_1 = arith.constant 0 : i32
    return %c0_i32, %c0_i32_0 : i32, i32
  }
  func.func @transform_2(%arg0: i32) -> (i32, i32) {
    %c0_i32 = arith.constant 0 : i32
    %c0_i32_0 = arith.constant 0 : i32
    %c0_i32_1 = arith.constant 0 : i32
    return %c0_i32, %c0_i32_0 : i32, i32
  }
  func.func @transform_3(%arg0: i32) -> (i32, i32) {
    %c0_i32 = arith.constant 0 : i32
    %c0_i32_0 = arith.constant 0 : i32
    %c0_i32_1 = arith.constant 0 : i32
    return %c0_i32, %c0_i32_0 : i32, i32
  }
  func.func @transform_4(%arg0: i32) -> (i32, i32) {
    %c0_i32 = arith.constant 0 : i32
    %c0_i32_0 = arith.constant 0 : i32
    %c0_i32_1 = arith.constant 0 : i32
    return %c0_i32, %c0_i32_0 : i32, i32
  }
  func.func @transform_5(%arg0: i32) -> (i32, i32) {
    %c0_i32 = arith.constant 0 : i32
    %c0_i32_0 = arith.constant 0 : i32
    %c0_i32_1 = arith.constant 0 : i32
    return %c0_i32, %c0_i32_0 : i32, i32
  }
  func.func @transform_6(%arg0: i32) -> (i32, i32) {
    %c0_i32 = arith.constant 0 : i32
    %c0_i32_0 = arith.constant 0 : i32
    %c0_i32_1 = arith.constant 0 : i32
    return %c0_i32, %c0_i32_0 : i32, i32
  }
  func.func @transform_7(%arg0: i32) -> (i32, i32) {
    %c0_i32 = arith.constant 0 : i32
    %c0_i32_0 = arith.constant 0 : i32
    %c0_i32_1 = arith.constant 0 : i32
    return %c0_i32, %c0_i32_0 : i32, i32
  }
  func.func @transform_8(%arg0: i32) -> (i32, i32) {
    %c0_i32 = arith.constant 0 : i32
    %c0_i32_0 = arith.constant 0 : i32
    %c0_i32_1 = arith.constant 0 : i32
    return %c0_i32, %c0_i32_0 : i32, i32
  }
  func.func @transform_9(%arg0: i32) -> (i32, i32) {
    %c0_i32 = arith.constant 0 : i32
    %c0_i32_0 = arith.constant 0 : i32
    return %arg0, %c0_i32 : i32, i32
  }
}

</mosaic_0001>

<bundles_post_ra>
// kernel: tpu_custom_call.1
= control target key start
LH: loop header
LB: loop body
LE: loop exit
PB: predicated region body
PF: predicated region fallthrough
CT: control target
= control target key end

     0   :  { %vm188_vm0 = vcmask 1044480   ;;  %vm189_vm1 = vcmask 1045504   ;;  %v541_v2 = vmov 65535   ;;  %vm184_vm2 = vcmask 89088   ;;  %s542_s27 = smov 127   ;;  %s703_s1 = inlined_call_operand.vmem [shape: bf16[267,36], index: 1, kind: input, shape index: {}]   ;;  %s704_s0 = inlined_call_operand.vmem [shape: bf16[8,267], index: 0, kind: input, shape index: {}]   ;;  %s705_s2 = inlined_call_operand.vmem [shape: f32[1,36], index: 2, kind: input, shape index: {}]   ;;  %s706_s4 = inlined_call_operand.vmem [shape: f32[1,36], index: 4, kind: input, shape index: {}]   ;;  %s707_s3 = inlined_call_operand.vmem [shape: bf16[36,36], index: 3, kind: input, shape index: {}]   ;;  %s708_s5 = inlined_call_operand.vmem [shape: bf16[36,36], index: 5, kind: input, shape index: {}]   ;;  %s709_s6 = inlined_call_operand.vmem [shape: f32[1,36], index: 6, kind: input, shape index: {}]   ;;  %s710_s7 = inlined_call_operand.vmem [shape: bf16[36,2], index: 7, kind: input, shape index: {}]   ;;  %s711_s8 = inlined_call_operand.vmem [shape: f32[1,2], index: 8, kind: input, shape index: {}]   ;;  %s712_s9 = inlined_call_operand.vmem [shape: f32[8,2], index: 9, kind: output, shape index: {}]  }
   0x1   :  { %v509_v0 = vld [vmem:[%s703_s1 + $0x38] sm:$0xff]  ;;  %v190_v3 = vsel %vm188_vm0, 4294967295, %v541_v2  ;;  %v508_v4 = vld [vmem:[%s703_s1 + $0x30] sm:$0xff]  ;;  %v472_v6 = vld [vmem:[%s703_s1 + $0x80] sm:$0xf]  ;;  %vm264_vm3 = vcmask 1041408  }
   0x2   :  { %v517_v1 = vld [vmem:[%s703_s1 + $0x78] sm:$0xff]  ;;  %195 = vmatpush.bf16.msra.mxu0 %v509_v0  ;;  %v516_v5 = vld [vmem:[%s703_s1 + $0x70] sm:$0xff]  ;;  %v518_v7 = vld [vmem:[%s703_s1 + $0x80] sm:$0x30]  ;;  %v191_v8 = vsel %vm189_vm1, %v190_v3, 0  ;;  %vm260_vm4 = vcmask 293888  }
   0x3   :  { %208 = vmatpush.bf16.msra.mxu1 %v517_v1  ;;  %v473_v9 = vor.u32 %v518_v7, %v472_v6  ;;  %v34_v10 = vld [vmem:[%s704_s0 + $0x8] sm:$0xf]  ;;  %v506_v16 = vld [vmem:[%s703_s1 + $0x20] sm:$0xff]  ;;  %v505_v18 = vld [vmem:[%s703_s1 + $0x18] sm:$0xff]  ;;  %vm400_vm5 = vcmask 15360  }
   0x4   :  { %v77_v11 = vunpack.c.l.b16 %v34_v10  ;;  %v507_v12 = vld [vmem:[%s703_s1 + $0x28] sm:$0xff]  ;;  %v514_v17 = vld [vmem:[%s703_s1 + $0x60] sm:$0xff]  ;;  %v513_v19 = vld [vmem:[%s703_s1 + $0x58] sm:$0xff] }
   0x5   :  { %v515_v13 = vld [vmem:[%s703_s1 + $0x68] sm:$0xff]  ;;  %v193_v14 = vand.u32 %v473_v9, %v191_v8  ;;  %v504_v20 = vld [vmem:[%s703_s1 + $0x10] sm:$0xff]  ;;  %v33_v24 = vld [vmem:[%s704_s0] sm:$0xff] }
   0x6   :  { %196 = vmatpush.bf16.msra.mxu0 %v508_v4  ;;  %v80_v15 = vpack.c.b16 %v77_v11, %v77_v11  ;;  %v512_v21 = vld [vmem:[%s703_s1 + $0x50] sm:$0xff]  ;;  %v503_v22 = vld [vmem:[%s703_s1 + $0x8] sm:$0xff]  ;;  %v75_v25 = vunpack.c.l.b16 %v33_v24  ;;  %v76_v26 = vunpack.c.h.b16 %v33_v24  ;;  %v502_v27 = vld [vmem:[%s703_s1] sm:$0xff] }
   0x7   :  { %209 = vmatpush.bf16.msra.mxu1 %v516_v5  ;;  %228 = vmatpush.bf16.msra.mxu2 %v193_v14  ;;  %v511_v23 = vld [vmem:[%s703_s1 + $0x48] sm:$0xff]  ;;  %v510_v28 = vld [vmem:[%s703_s1 + $0x40] sm:$0xff]  ;;  %v240_v31 = vld [vmem:[%s707_s3 + $0x10] sm:$0x3] }
   0x8   :  { %v78_v29 = vpack.c.b16 %v75_v25, %v75_v25  ;;  %v79_v30 = vpack.c.b16 %v76_v26, %v76_v26  ;;  %v254_v32 = vunpack.c.l.b16 %v240_v31  ;;  %v520_v35 = vld [vmem:[%s707_s3 + $0x8] sm:$0xff]  ;;  %v519_v36 = vld [vmem:[%s707_s3] sm:$0xff]  ;;  %v287_v37 = vld [vmem:[%s708_s5 + $0x10] sm:$0x3] }
   0x9   :  { %v301_v38 = vunpack.c.l.b16 %v287_v37  ;;  %v522_v42 = vld [vmem:[%s708_s5 + $0x8] sm:$0xff]  ;;  %v531_v44 = vld [vmem:[%s705_s2] ss:$0 sm:$0xff]  ;;  %v332_v55 = vld [vmem:[%s710_s7 + $0x10] sm:$0x3] }
   0xa   :  { %197 = vmatpush.bf16.msra.mxu0 %v507_v12  ;;  %474 = vmatmul.msk.bf16.vlgmr.msra.gmra.mxu2 %vm184_vm2, %v80_v15  ;;  %v257_v33 = vpack.c.b16 %v254_v32, %v254_v32  ;;  %v521_v54 = vld [vmem:[%s708_s5] sm:$0xff]  ;;  %v346_v56 = vunpack.c.l.b16 %v332_v55  ;;  %v524_v59 = vld [vmem:[%s710_s7 + $0x8] sm:$0xff] }
   0xb   :  { %210 = vmatpush.bf16.msra.mxu1 %v515_v13  ;;  %v304_v39 = vpack.c.b16 %v301_v38, %v301_v38  ;;  %v532_v60 = vld [vmem:[%s706_s4] ss:$0 sm:$0xff] }
   0xc   :  { %v266_v34 = vsel %vm264_vm3, %v257_v33, 0  ;;  %v349_v57 = vpack.c.b16 %v346_v56, %v346_v56  ;;  %v523_v2 = vld [vmem:[%s710_s7] sm:$0xff]  ;;  %s543_s7 = smov 1  }
   0xd   :  { %273 = vmatpush.bf16.msra.mxu3 %v266_v34  ;;  %v311_v41 = vsel %vm264_vm3, %v304_v39, 0  ;;  %v533_v3 = vld [vmem:[%s709_s6] ss:$0 sm:$0xff] }
   0xe   :  { %198 = vmatpush.bf16.msra.mxu0 %v506_v16  ;;  %318 = vmatpush.bf16.msrb.mxu2 %v311_v41  ;;  %v356_v58 = vsel %vm264_vm3, %v349_v57, 0  ;;  %v534_v9 = vld [vmem:[%s711_s8] ss:$0 sm:$0xff] }
   0xf   :  { %211 = vmatpush.bf16.msra.mxu1 %v514_v17 }
  0x11   :  { %274 = vmatpush.bf16.msra.mxu3 %v520_v35 }
  0x12   :  { %199 = vmatpush.bf16.msra.mxu0 %v505_v18  ;;  %319 = vmatpush.bf16.msrb.mxu2 %v522_v42 }
  0x13   :  { %212 = vmatpush.bf16.msra.mxu1 %v513_v19  ;;  %v544_v19 = vmov 0  }
  0x14   :  { %529 = vset.pattern.permute.xlu1 %v544_v19  ;;  %530 = vset.pattern.permute.xlu0 %v544_v19 }
  0x15   :  { %275 = vmatpush.bf16.msra.mxu3 %v519_v36 }
  0x16   :  { %200 = vmatpush.bf16.msra.mxu0 %v504_v20  ;;  %320 = vmatpush.bf16.msrb.mxu2 %v521_v54 }
  0x17   :  { %213 = vmatpush.bf16.msra.mxu1 %v512_v21 }
  0x19   :  { %363 = vmatpush.bf16.msrb.mxu3 %v356_v58 }
  0x1a   :  { %201 = vmatpush.bf16.msra.mxu0 %v503_v22 }
  0x1b   :  { %214 = vmatpush.bf16.msra.mxu1 %v511_v23 }
  0x1d   :  { %364 = vmatpush.bf16.msrb.mxu3 %v524_v59 }
  0x1e   :  { %202 = vmatpush.bf16.msra.mxu0 %v502_v27 }
  0x1f   :  { %215 = vmatpush.bf16.msra.mxu1 %v510_v28 }
  0x21   :  { %203 = vmatmul.bf16.vlgmr.msra.gmra.mxu0 %v78_v29  ;;  %365 = vmatpush.bf16.msrb.mxu3 %v523_v2 }
  0x22   :  { %216 = vmatmul.bf16.vlgmr.msra.gmra.mxu1 %v79_v30 }
  0x8d   :  { %v230_v40 = vpop.f32.mrf.mxu2 }
  0x95   :  { %v232_v43 = vpop.f32.mrf.mxu2 }
  0x9e   :  { %v204_v45 = vpop.f32.mrf.mxu0 }
  0x9f   :  { %v217_v46 = vpop.f32.mrf.mxu1  ;;  %v205_v47 = vadd.f32 %v531_v44, %v204_v45 }
  0xa1   :  { %v218_v48 = vadd.f32 %v217_v46, %v205_v47 }
  0xa3   :  { %v231_v49 = vadd.f32 %v230_v40, %v218_v48 }
  0xa5   :  { %v234_v50 = vmax.f32 %v231_v49, 0.0 }
  0xa6   :  { %v206_v51 = vpop.f32.mrf.mxu0 }
  0xa7   :  { %v219_v52 = vpop.f32.mrf.mxu1  ;;  %v235_v53 = vpack.c.bf16 %v234_v50, %v234_v50 }
  0xa9   :  { %483 = vmatmul.msk.bf16.vlgmr.msra.gmra.mxu3 %vm260_vm4, %v235_v53 }
 0x12c   :  { %v277_v61 = vpop.f32.mrf.mxu3 }
 0x12d   :  { %v278_v62 = vadd.f32 %v532_v60, %v277_v61 }
 0x12f   :  { %v281_v63 = vmax.f32 %v278_v62, 0.0 }
 0x131   :  { %v282_v0 = vpack.c.bf16 %v281_v63, %v281_v63 }
 0x133   :  { %492 = vmatmul.msk.bf16.vlgmr.msrb.gmra.mxu2 %vm260_vm4, %v282_v0 }
 0x134   :  { %v279_v1 = vpop.f32.mrf.mxu3 }
 0x1b6   :  { %v322_v4 = vpop.f32.mrf.mxu2 }
 0x1b7   :  { %v323_v5 = vadd.f32 %v533_v3, %v322_v4 }
 0x1b9   :  { %v326_v6 = vmax.f32 %v323_v5, 0.0 }
 0x1bb   :  { %v327_v7 = vpack.c.bf16 %v326_v6, %v326_v6 }
 0x1bd   :  { %501 = vmatmul.msk.bf16.vlgmr.msrb.gmra.mxu3 %vm260_vm4, %v327_v7 }
 0x1be   :  { %v324_v8 = vpop.f32.mrf.mxu2 }
 0x240   :  { %v367_v10 = vpop.f32.mrf.mxu3 }
 0x241   :  { %v368_v11 = vadd.f32 %v534_v9, %v367_v10 }
 0x243   :  { %372 = vrot.lane.b32.xlu0 %v368_v11, %s542_s27 }
 0x248   :  { %v369_v12 = vpop.f32.mrf.mxu3 }
 0x2b5   :  { %v373_v13 = vpop.permute.xlu0 %372 }
 0x2b6   :  { %v375_v14 = vmax.f32 %v368_v11, %v373_v13 }
 0x2b8   :  { %380 = vrot.lane.b32.xlu0 %v375_v14, %s543_s7  ;;  %v376_v20 = vsub.f32 %v368_v11, %v375_v14 }
 0x2ba   :  { %v377_v21 = vmul.f32 1.442695, %v376_v20 }
 0x32a   :  { %v381_v15 = vpop.permute.xlu0 %380 }
 0x32b   :  { %v383_v16 = vsub.f32 %v368_v11, %v381_v15 }
 0x32d   :  { %v384_v17 = vmul.f32 1.442695, %v383_v16 }
 0x32f   :  { %535 = vpow2.f32 %v384_v17 }
 0x330   :  { %537 = vpow2.f32 %v377_v21 }
 0x335   :  { %v536_v18 = vpop.eup %535 }
 0x336   :  { %387 = vrot.lane.b32.xlu1 %v536_v18, %s542_s27  ;;  %v538_v22 = vpop.eup %537 }
 0x3a8   :  { %v388_v23 = vpop.permute.xlu1 %387 }
 0x3a9   :  { %v390_v24 = vadd.f32 %v538_v22, %v388_v23 }
 0x3ab   :  { %539 = vlog2.f32 %v390_v24 }
 0x3b1   :  { %v540_v25 = vpop.eup %539 }
 0x3b2   :  { %v392_v26 = vmul.f32 0.6931472, %v540_v25 }
 0x3b4   :  { %v393_v27 = vadd.f32 %v392_v26, %v375_v14 }
 0x3b6   :  { %396 = vperm.xlu1 %529, %v393_v27  }
 0x428   :  { %v397_v28 = vpop.permute.xlu1 %396 }
 0x429   :  { %v399_v29 = vsub.f32 %v368_v11, %v397_v28 }
 0x42b   :  { %401 = vst.msk [vmem:[%s712_s9] sm:$0xff] %vm400_vm5, %v399_v29 }

</bundles_post_ra>
